<compile_context>
chip_gen: v5e
topology: v5e:2x2
jax: 0.10.0
libtpu: 0.0.40
codegen_flags: <defaults>
</compile_context>

<pallas_src>
import jax
import jax.numpy as jnp
from jax.experimental import pallas as pl
from jax.experimental.pallas import tpu as pltpu

embedding_dim = 8


def skipgram_kernel(idx_ref,      # (B,)   int32, scalar-prefetch (SMEM)
                    emb_hbm,      # (V, D) embedding table, left in HBM (pl.ANY)
                    w_ref,        # (TV, D) output-layer weight tile (untransposed)
                    b_ref,        # (1, TV) bias tile (f32)
                    out_ref,      # (TB, V) output block, resident across vocab sweep
                    embeds,       # (TB, D) VMEM scratch: gathered embedding rows
                    logits_sc,    # (nvt, TB, TV) VMEM scratch: raw logits per vocab tile
                    m_sc,         # (TB, 1) running max (f32)
                    l_sc,         # (TB, 1) running sum-exp (f32)
                    copy_sems):   # (TB,)  DMA semaphores
    i = pl.program_id(0)          # batch tile
    j = pl.program_id(1)          # vocab tile (reduction axis, last in grid)

    TB, _ = embeds.shape
    TV = w_ref.shape[0]
    nvt = logits_sc.shape[0]      # static number of vocab tiles

    # ---- once per batch tile: DMA-gather TB embedding rows from HBM --------
    @pl.when(j == 0)
    def _():
        copies = []
        for r in range(TB):                        # static unroll, TB is small
            row = idx_ref[i * TB + r]              # scalar read from SMEM
            cp = pltpu.make_async_copy(
                emb_hbm.at[pl.ds(row, 1), :],
                embeds.at[pl.ds(r, 1), :],
                copy_sems.at[r])
            cp.start()
            copies.append(cp)
        for cp in copies:
            cp.wait()
        m_sc[...] = jnp.full_like(m_sc, -jnp.inf)
        l_sc[...] = jnp.zeros_like(l_sc)

    # ---- logits for this vocab tile: embeds (TB,D) . W_tile (TV,D)^T + b ----
    x = embeds[...].astype(w_ref.dtype)            # bf16 path if weights are bf16
    logits = jax.lax.dot_general(
        x, w_ref[...], (((1,), (1,)), ((), ())),
        preferred_element_type=jnp.float32) + b_ref[...]          # (TB, TV) f32

    # ---- online log-softmax statistics over the vocab dimension ------------
    m_prev = m_sc[...]
    m_new = jnp.maximum(m_prev, jnp.max(logits, axis=1, keepdims=True))
    l_sc[...] = (l_sc[...] * jnp.exp(m_prev - m_new)
                 + jnp.sum(jnp.exp(logits - m_new), axis=1, keepdims=True))
    m_sc[...] = m_new
    logits_sc[j] = logits                          # dynamic store on leading axis

    # ---- finalize: normalize all stashed tiles into the resident output ----
    @pl.when(j == nvt - 1)
    def _():
        lse = m_sc[...] + jnp.log(l_sc[...])       # (TB, 1)
        for jj in range(nvt):                      # static, lane-dense slices
            out_ref[:, jj * TV:(jj + 1) * TV] = logits_sc[jj] - lse


def skipgram_forward(indices, emb_table, w_out, b_out, *,
                     block_b=8, block_v=512):
    """log_probs = log_softmax(emb_table[indices] @ w_out.T + b_out, axis=1)."""
    B = indices.shape[0]
    V, D = emb_table.shape
    assert w_out.shape == (V, D) and b_out.shape == (V,)

    TB = block_b if (B % block_b == 0) else B
    TV = block_v if (V % block_v == 0) else V
    nbt, nvt = B // TB, V // TV

    # Clamp indices: an OOB index must never become an unchecked HBM DMA.
    idx = jnp.clip(indices.astype(jnp.int32), 0, V - 1)
    bias2d = b_out.reshape(1, V).astype(jnp.float32)   # cheap metadata reshape

    grid_spec = pltpu.PrefetchScalarGridSpec(
        num_scalar_prefetch=1,
        grid=(nbt, nvt),                                  # reduction (V) axis last
        in_specs=[
            pl.BlockSpec(memory_space=pl.ANY),            # embedding table stays in HBM
            pl.BlockSpec((TV, D), lambda i, j, ids: (j, 0)),   # weight (V, D), no transpose
            pl.BlockSpec((1, TV), lambda i, j, ids: (0, j)),   # bias tile
        ],
        out_specs=pl.BlockSpec((TB, V), lambda i, j, ids: (i, 0)),  # resident across j
        scratch_shapes=[
            pltpu.VMEM((TB, D), emb_table.dtype),     # gathered embedding rows
            pltpu.VMEM((nvt, TB, TV), jnp.float32),   # raw logits per vocab tile
            pltpu.VMEM((TB, 1), jnp.float32),         # running max
            pltpu.VMEM((TB, 1), jnp.float32),         # running sum-exp
            pltpu.SemaphoreType.DMA((TB,)),           # one semaphore per gathered row
        ],
    )

    return pl.pallas_call(
        skipgram_kernel,
        grid_spec=grid_spec,
        out_shape=jax.ShapeDtypeStruct((B, V), jnp.float32),
        compiler_params=pltpu.CompilerParams(
            dimension_semantics=("parallel", "arbitrary")),
        cost_estimate=pl.CostEstimate(
            flops=2 * B * D * V,
            transcendentals=B * V,
            bytes_accessed=(V * D * w_out.dtype.itemsize        # weight stream
                            + B * D * emb_table.dtype.itemsize  # gathered rows
                            + 4 * V                             # bias
                            + 4 * B * V)),                      # log-prob output
    )(idx, emb_table, w_out, bias2d)


if __name__ == "__main__":
    key = jax.random.PRNGKey(0)
    k1, k2, k3, k4 = jax.random.split(key, 4)

    vocab_size = 512
    batch = 16

    # nn.Embedding(V, D): weight ~ N(0, 1);
    # nn.Linear(D, V): weight/bias ~ U(-1/sqrt(D), 1/sqrt(D)).
    emb_table = jax.random.normal(k1, (vocab_size, embedding_dim), jnp.float32)
    bound = 1.0 / (embedding_dim ** 0.5)
    w_out = jax.random.uniform(k2, (vocab_size, embedding_dim), jnp.float32, -bound, bound)
    b_out = jax.random.uniform(k3, (vocab_size,), jnp.float32, -bound, bound)
    indices = jax.random.randint(k4, (batch,), 0, vocab_size, dtype=jnp.int32)

    # f32 run; block_v=128 -> 4 vocab tiles, exercising the online log-softmax.
    log_probs = skipgram_forward(indices, emb_table, w_out, b_out,
                                 block_b=8, block_v=128)
    jax.block_until_ready(log_probs)

    # Pure-JAX reference (matches the PyTorch forward for 1-D index inputs).
    embeds_ref = emb_table[indices]                       # (B, D)
    logits_ref = embeds_ref @ w_out.T + b_out             # (B, V)
    ref = jax.nn.log_softmax(logits_ref, axis=1)
    assert log_probs.shape == (batch, vocab_size)
    assert jnp.allclose(log_probs, ref, atol=1e-5), "f32 Pallas output mismatch"
    assert jnp.allclose(jnp.exp(log_probs).sum(axis=1), 1.0, atol=1e-4)

    # bf16 weight stream (halves HBM traffic for the dominant (V, D) stream;
    # MXU-native bf16 with f32 accumulation).  Loose check vs. f32 reference.
    log_probs_bf16 = skipgram_forward(indices, emb_table,
                                      w_out.astype(jnp.bfloat16), b_out,
                                      block_b=8, block_v=128)
    jax.block_until_ready(log_probs_bf16)
    assert jnp.allclose(log_probs_bf16, ref, atol=0.15), "bf16 Pallas output mismatch"

    print("KERNEL_OK")
</pallas_src>

<mosaic_0001>
module attributes {stable_mosaic.version = 11 : i64} {
  func.func @skipgram_kernel(%arg0: i32, %arg1: i32, %arg2: memref<16xi32, #tpu.memory_space<smem>>, %arg3: memref<512x8xf32, #tpu.memory_space<any>>, %arg4: memref<128x8xf32, #tpu.memory_space<vmem>>, %arg5: memref<1x128xf32, #tpu.memory_space<vmem>>, %arg6: memref<8x512xf32, #tpu.memory_space<vmem>>, %arg7: memref<8x8xf32, #tpu.memory_space<vmem>>, %arg8: memref<4x8x128xf32, #tpu.memory_space<vmem>>, %arg9: memref<8x1xf32, #tpu.memory_space<vmem>>, %arg10: memref<8x1xf32, #tpu.memory_space<vmem>>, %arg11: memref<8x!tpu.dma_semaphore, #tpu.memory_space<semaphore_mem>>) attributes {dimension_semantics = [#tpu.dimension_semantics<parallel>, #tpu.dimension_semantics<arbitrary>], iteration_bounds = array<i64: 2, 4>, scalar_prefetch = 1 : i64, scratch_operands = 5 : i64, tpu.core_type = #tpu.core_type<tc>, window_params = [{}, {transform_indices = @transform_1, window_bounds = array<i64: 128, 8>}, {transform_indices = @transform_2, window_bounds = array<i64: 1, 128>}, {transform_indices = @transform_3, window_bounds = array<i64: 8, 512>}]} {
    %c0_i32 = arith.constant 0 : i32
    %0 = arith.cmpi eq, %arg1, %c0_i32 : i32
    %1 = arith.extui %0 : i1 to i32
    %c0_i32_0 = arith.constant 0 : i32
    %2 = arith.cmpi ne, %1, %c0_i32_0 : i32
    scf.if %2 {
      %c8_i32 = arith.constant 8 : i32
      %32 = arith.muli %arg0, %c8_i32 : i32
      %c0_i32_19 = arith.constant 0 : i32
      %33 = arith.addi %32, %c0_i32_19 : i32
      %34 = arith.index_cast %33 : i32 to index
      %35 = memref.load %arg2[%34] : memref<16xi32, #tpu.memory_space<smem>>
      %c0_i32_20 = arith.constant 0 : i32
      %c0_i32_21 = arith.constant 0 : i32
      %36 = tpu.memref_slice %arg3[%35, %c0_i32_21] : memref<512x8xf32, #tpu.memory_space<any>> -> memref<1x8xf32, #tpu.memory_space<any>>
      %c0_i32_22 = arith.constant 0 : i32
      %c0_i32_23 = arith.constant 0 : i32
      %37 = tpu.memref_slice %arg7[%c0_i32_22, %c0_i32_23] : memref<8x8xf32, #tpu.memory_space<vmem>> -> memref<1x8xf32, #tpu.memory_space<vmem>>
      %38 = tpu.memref_slice %arg11[%c0_i32_20] : memref<8x!tpu.dma_semaphore, #tpu.memory_space<semaphore_mem>> -> memref<1x!tpu.dma_semaphore, #tpu.memory_space<semaphore_mem>>
      %39 = tpu.memref_squeeze %38 : memref<1x!tpu.dma_semaphore, #tpu.memory_space<semaphore_mem>> -> memref<!tpu.dma_semaphore, #tpu.memory_space<semaphore_mem>>
      tpu.enqueue_dma source(%36 : memref<1x8xf32, #tpu.memory_space<any>>) target(%37 : memref<1x8xf32, #tpu.memory_space<vmem>>) target_semaphore(%39 : memref<!tpu.dma_semaphore, #tpu.memory_space<semaphore_mem>>)
      %c8_i32_24 = arith.constant 8 : i32
      %40 = arith.muli %arg0, %c8_i32_24 : i32
      %c1_i32 = arith.constant 1 : i32
      %41 = arith.addi %40, %c1_i32 : i32
      %42 = arith.index_cast %41 : i32 to index
      %43 = memref.load %arg2[%42] : memref<16xi32, #tpu.memory_space<smem>>
      %c1_i32_25 = arith.constant 1 : i32
      %c0_i32_26 = arith.constant 0 : i32
      %44 = tpu.memref_slice %arg3[%43, %c0_i32_26] : memref<512x8xf32, #tpu.memory_space<any>> -> memref<1x8xf32, #tpu.memory_space<any>>
      %c1_i32_27 = arith.constant 1 : i32
      %c0_i32_28 = arith.constant 0 : i32
      %45 = tpu.memref_slice %arg7[%c1_i32_27, %c0_i32_28] : memref<8x8xf32, #tpu.memory_space<vmem>> -> memref<1x8xf32, #tpu.memory_space<vmem>>
      %46 = tpu.memref_slice %arg11[%c1_i32_25] : memref<8x!tpu.dma_semaphore, #tpu.memory_space<semaphore_mem>> -> memref<1x!tpu.dma_semaphore, #tpu.memory_space<semaphore_mem>>
      %47 = tpu.memref_squeeze %46 : memref<1x!tpu.dma_semaphore, #tpu.memory_space<semaphore_mem>> -> memref<!tpu.dma_semaphore, #tpu.memory_space<semaphore_mem>>
      tpu.enqueue_dma source(%44 : memref<1x8xf32, #tpu.memory_space<any>>) target(%45 : memref<1x8xf32, #tpu.memory_space<vmem>>) target_semaphore(%47 : memref<!tpu.dma_semaphore, #tpu.memory_space<semaphore_mem>>)
      %c8_i32_29 = arith.constant 8 : i32
      %48 = arith.muli %arg0, %c8_i32_29 : i32
      %c2_i32 = arith.constant 2 : i32
      %49 = arith.addi %48, %c2_i32 : i32
      %50 = arith.index_cast %49 : i32 to index
      %51 = memref.load %arg2[%50] : memref<16xi32, #tpu.memory_space<smem>>
      %c2_i32_30 = arith.constant 2 : i32
      %c0_i32_31 = arith.constant 0 : i32
      %52 = tpu.memref_slice %arg3[%51, %c0_i32_31] : memref<512x8xf32, #tpu.memory_space<any>> -> memref<1x8xf32, #tpu.memory_space<any>>
      %c2_i32_32 = arith.constant 2 : i32
      %c0_i32_33 = arith.constant 0 : i32
      %53 = tpu.memref_slice %arg7[%c2_i32_32, %c0_i32_33] : memref<8x8xf32, #tpu.memory_space<vmem>> -> memref<1x8xf32, #tpu.memory_space<vmem>>
      %54 = tpu.memref_slice %arg11[%c2_i32_30] : memref<8x!tpu.dma_semaphore, #tpu.memory_space<semaphore_mem>> -> memref<1x!tpu.dma_semaphore, #tpu.memory_space<semaphore_mem>>
      %55 = tpu.memref_squeeze %54 : memref<1x!tpu.dma_semaphore, #tpu.memory_space<semaphore_mem>> -> memref<!tpu.dma_semaphore, #tpu.memory_space<semaphore_mem>>
      tpu.enqueue_dma source(%52 : memref<1x8xf32, #tpu.memory_space<any>>) target(%53 : memref<1x8xf32, #tpu.memory_space<vmem>>) target_semaphore(%55 : memref<!tpu.dma_semaphore, #tpu.memory_space<semaphore_mem>>)
      %c8_i32_34 = arith.constant 8 : i32
      %56 = arith.muli %arg0, %c8_i32_34 : i32
      %c3_i32_35 = arith.constant 3 : i32
      %57 = arith.addi %56, %c3_i32_35 : i32
      %58 = arith.index_cast %57 : i32 to index
      %59 = memref.load %arg2[%58] : memref<16xi32, #tpu.memory_space<smem>>
      %c3_i32_36 = arith.constant 3 : i32
      %c0_i32_37 = arith.constant 0 : i32
      %60 = tpu.memref_slice %arg3[%59, %c0_i32_37] : memref<512x8xf32, #tpu.memory_space<any>> -> memref<1x8xf32, #tpu.memory_space<any>>
      %c3_i32_38 = arith.constant 3 : i32
      %c0_i32_39 = arith.constant 0 : i32
      %61 = tpu.memref_slice %arg7[%c3_i32_38, %c0_i32_39] : memref<8x8xf32, #tpu.memory_space<vmem>> -> memref<1x8xf32, #tpu.memory_space<vmem>>
      %62 = tpu.memref_slice %arg11[%c3_i32_36] : memref<8x!tpu.dma_semaphore, #tpu.memory_space<semaphore_mem>> -> memref<1x!tpu.dma_semaphore, #tpu.memory_space<semaphore_mem>>
      %63 = tpu.memref_squeeze %62 : memref<1x!tpu.dma_semaphore, #tpu.memory_space<semaphore_mem>> -> memref<!tpu.dma_semaphore, #tpu.memory_space<semaphore_mem>>
      tpu.enqueue_dma source(%60 : memref<1x8xf32, #tpu.memory_space<any>>) target(%61 : memref<1x8xf32, #tpu.memory_space<vmem>>) target_semaphore(%63 : memref<!tpu.dma_semaphore, #tpu.memory_space<semaphore_mem>>)
      %c8_i32_40 = arith.constant 8 : i32
      %64 = arith.muli %arg0, %c8_i32_40 : i32
      %c4_i32 = arith.constant 4 : i32
      %65 = arith.addi %64, %c4_i32 : i32
      %66 = arith.index_cast %65 : i32 to index
      %67 = memref.load %arg2[%66] : memref<16xi32, #tpu.memory_space<smem>>
      %c4_i32_41 = arith.constant 4 : i32
      %c0_i32_42 = arith.constant 0 : i32
      %68 = tpu.memref_slice %arg3[%67, %c0_i32_42] : memref<512x8xf32, #tpu.memory_space<any>> -> memref<1x8xf32, #tpu.memory_space<any>>
      %c4_i32_43 = arith.constant 4 : i32
      %c0_i32_44 = arith.constant 0 : i32
      %69 = tpu.memref_slice %arg7[%c4_i32_43, %c0_i32_44] : memref<8x8xf32, #tpu.memory_space<vmem>> -> memref<1x8xf32, #tpu.memory_space<vmem>>
      %70 = tpu.memref_slice %arg11[%c4_i32_41] : memref<8x!tpu.dma_semaphore, #tpu.memory_space<semaphore_mem>> -> memref<1x!tpu.dma_semaphore, #tpu.memory_space<semaphore_mem>>
      %71 = tpu.memref_squeeze %70 : memref<1x!tpu.dma_semaphore, #tpu.memory_space<semaphore_mem>> -> memref<!tpu.dma_semaphore, #tpu.memory_space<semaphore_mem>>
      tpu.enqueue_dma source(%68 : memref<1x8xf32, #tpu.memory_space<any>>) target(%69 : memref<1x8xf32, #tpu.memory_space<vmem>>) target_semaphore(%71 : memref<!tpu.dma_semaphore, #tpu.memory_space<semaphore_mem>>)
      %c8_i32_45 = arith.constant 8 : i32
      %72 = arith.muli %arg0, %c8_i32_45 : i32
      %c5_i32 = arith.constant 5 : i32
      %73 = arith.addi %72, %c5_i32 : i32
      %74 = arith.index_cast %73 : i32 to index
      %75 = memref.load %arg2[%74] : memref<16xi32, #tpu.memory_space<smem>>
      %c5_i32_46 = arith.constant 5 : i32
      %c0_i32_47 = arith.constant 0 : i32
      %76 = tpu.memref_slice %arg3[%75, %c0_i32_47] : memref<512x8xf32, #tpu.memory_space<any>> -> memref<1x8xf32, #tpu.memory_space<any>>
      %c5_i32_48 = arith.constant 5 : i32
      %c0_i32_49 = arith.constant 0 : i32
      %77 = tpu.memref_slice %arg7[%c5_i32_48, %c0_i32_49] : memref<8x8xf32, #tpu.memory_space<vmem>> -> memref<1x8xf32, #tpu.memory_space<vmem>>
      %78 = tpu.memref_slice %arg11[%c5_i32_46] : memref<8x!tpu.dma_semaphore, #tpu.memory_space<semaphore_mem>> -> memref<1x!tpu.dma_semaphore, #tpu.memory_space<semaphore_mem>>
      %79 = tpu.memref_squeeze %78 : memref<1x!tpu.dma_semaphore, #tpu.memory_space<semaphore_mem>> -> memref<!tpu.dma_semaphore, #tpu.memory_space<semaphore_mem>>
      tpu.enqueue_dma source(%76 : memref<1x8xf32, #tpu.memory_space<any>>) target(%77 : memref<1x8xf32, #tpu.memory_space<vmem>>) target_semaphore(%79 : memref<!tpu.dma_semaphore, #tpu.memory_space<semaphore_mem>>)
      %c8_i32_50 = arith.constant 8 : i32
      %80 = arith.muli %arg0, %c8_i32_50 : i32
      %c6_i32 = arith.constant 6 : i32
      %81 = arith.addi %80, %c6_i32 : i32
      %82 = arith.index_cast %81 : i32 to index
      %83 = memref.load %arg2[%82] : memref<16xi32, #tpu.memory_space<smem>>
      %c6_i32_51 = arith.constant 6 : i32
      %c0_i32_52 = arith.constant 0 : i32
      %84 = tpu.memref_slice %arg3[%83, %c0_i32_52] : memref<512x8xf32, #tpu.memory_space<any>> -> memref<1x8xf32, #tpu.memory_space<any>>
      %c6_i32_53 = arith.constant 6 : i32
      %c0_i32_54 = arith.constant 0 : i32
      %85 = tpu.memref_slice %arg7[%c6_i32_53, %c0_i32_54] : memref<8x8xf32, #tpu.memory_space<vmem>> -> memref<1x8xf32, #tpu.memory_space<vmem>>
      %86 = tpu.memref_slice %arg11[%c6_i32_51] : memref<8x!tpu.dma_semaphore, #tpu.memory_space<semaphore_mem>> -> memref<1x!tpu.dma_semaphore, #tpu.memory_space<semaphore_mem>>
      %87 = tpu.memref_squeeze %86 : memref<1x!tpu.dma_semaphore, #tpu.memory_space<semaphore_mem>> -> memref<!tpu.dma_semaphore, #tpu.memory_space<semaphore_mem>>
      tpu.enqueue_dma source(%84 : memref<1x8xf32, #tpu.memory_space<any>>) target(%85 : memref<1x8xf32, #tpu.memory_space<vmem>>) target_semaphore(%87 : memref<!tpu.dma_semaphore, #tpu.memory_space<semaphore_mem>>)
      %c8_i32_55 = arith.constant 8 : i32
      %88 = arith.muli %arg0, %c8_i32_55 : i32
      %c7_i32 = arith.constant 7 : i32
      %89 = arith.addi %88, %c7_i32 : i32
      %90 = arith.index_cast %89 : i32 to index
      %91 = memref.load %arg2[%90] : memref<16xi32, #tpu.memory_space<smem>>
      %c7_i32_56 = arith.constant 7 : i32
      %c0_i32_57 = arith.constant 0 : i32
      %92 = tpu.memref_slice %arg3[%91, %c0_i32_57] : memref<512x8xf32, #tpu.memory_space<any>> -> memref<1x8xf32, #tpu.memory_space<any>>
      %c7_i32_58 = arith.constant 7 : i32
      %c0_i32_59 = arith.constant 0 : i32
      %93 = tpu.memref_slice %arg7[%c7_i32_58, %c0_i32_59] : memref<8x8xf32, #tpu.memory_space<vmem>> -> memref<1x8xf32, #tpu.memory_space<vmem>>
      %94 = tpu.memref_slice %arg11[%c7_i32_56] : memref<8x!tpu.dma_semaphore, #tpu.memory_space<semaphore_mem>> -> memref<1x!tpu.dma_semaphore, #tpu.memory_space<semaphore_mem>>
      %95 = tpu.memref_squeeze %94 : memref<1x!tpu.dma_semaphore, #tpu.memory_space<semaphore_mem>> -> memref<!tpu.dma_semaphore, #tpu.memory_space<semaphore_mem>>
      tpu.enqueue_dma source(%92 : memref<1x8xf32, #tpu.memory_space<any>>) target(%93 : memref<1x8xf32, #tpu.memory_space<vmem>>) target_semaphore(%95 : memref<!tpu.dma_semaphore, #tpu.memory_space<semaphore_mem>>)
      %c0_i32_60 = arith.constant 0 : i32
      %c0_i32_61 = arith.constant 0 : i32
      %96 = tpu.memref_slice %arg3[%35, %c0_i32_61] : memref<512x8xf32, #tpu.memory_space<any>> -> memref<1x8xf32, #tpu.memory_space<any>>
      %c0_i32_62 = arith.constant 0 : i32
      %c0_i32_63 = arith.constant 0 : i32
      %97 = tpu.memref_slice %arg7[%c0_i32_62, %c0_i32_63] : memref<8x8xf32, #tpu.memory_space<vmem>> -> memref<1x8xf32, #tpu.memory_space<vmem>>
      %98 = tpu.memref_slice %arg11[%c0_i32_60] : memref<8x!tpu.dma_semaphore, #tpu.memory_space<semaphore_mem>> -> memref<1x!tpu.dma_semaphore, #tpu.memory_space<semaphore_mem>>
      %99 = tpu.memref_squeeze %98 : memref<1x!tpu.dma_semaphore, #tpu.memory_space<semaphore_mem>> -> memref<!tpu.dma_semaphore, #tpu.memory_space<semaphore_mem>>
      tpu.wait_dma2 semaphore(%99 : memref<!tpu.dma_semaphore, #tpu.memory_space<semaphore_mem>>) src(%96 : memref<1x8xf32, #tpu.memory_space<any>>) dst(%97 : memref<1x8xf32, #tpu.memory_space<vmem>>)
      %c1_i32_64 = arith.constant 1 : i32
      %c0_i32_65 = arith.constant 0 : i32
      %100 = tpu.memref_slice %arg3[%43, %c0_i32_65] : memref<512x8xf32, #tpu.memory_space<any>> -> memref<1x8xf32, #tpu.memory_space<any>>
      %c1_i32_66 = arith.constant 1 : i32
      %c0_i32_67 = arith.constant 0 : i32
      %101 = tpu.memref_slice %arg7[%c1_i32_66, %c0_i32_67] : memref<8x8xf32, #tpu.memory_space<vmem>> -> memref<1x8xf32, #tpu.memory_space<vmem>>
      %102 = tpu.memref_slice %arg11[%c1_i32_64] : memref<8x!tpu.dma_semaphore, #tpu.memory_space<semaphore_mem>> -> memref<1x!tpu.dma_semaphore, #tpu.memory_space<semaphore_mem>>
      %103 = tpu.memref_squeeze %102 : memref<1x!tpu.dma_semaphore, #tpu.memory_space<semaphore_mem>> -> memref<!tpu.dma_semaphore, #tpu.memory_space<semaphore_mem>>
      tpu.wait_dma2 semaphore(%103 : memref<!tpu.dma_semaphore, #tpu.memory_space<semaphore_mem>>) src(%100 : memref<1x8xf32, #tpu.memory_space<any>>) dst(%101 : memref<1x8xf32, #tpu.memory_space<vmem>>)
      %c2_i32_68 = arith.constant 2 : i32
      %c0_i32_69 = arith.constant 0 : i32
      %104 = tpu.memref_slice %arg3[%51, %c0_i32_69] : memref<512x8xf32, #tpu.memory_space<any>> -> memref<1x8xf32, #tpu.memory_space<any>>
      %c2_i32_70 = arith.constant 2 : i32
      %c0_i32_71 = arith.constant 0 : i32
      %105 = tpu.memref_slice %arg7[%c2_i32_70, %c0_i32_71] : memref<8x8xf32, #tpu.memory_space<vmem>> -> memref<1x8xf32, #tpu.memory_space<vmem>>
      %106 = tpu.memref_slice %arg11[%c2_i32_68] : memref<8x!tpu.dma_semaphore, #tpu.memory_space<semaphore_mem>> -> memref<1x!tpu.dma_semaphore, #tpu.memory_space<semaphore_mem>>
      %107 = tpu.memref_squeeze %106 : memref<1x!tpu.dma_semaphore, #tpu.memory_space<semaphore_mem>> -> memref<!tpu.dma_semaphore, #tpu.memory_space<semaphore_mem>>
      tpu.wait_dma2 semaphore(%107 : memref<!tpu.dma_semaphore, #tpu.memory_space<semaphore_mem>>) src(%104 : memref<1x8xf32, #tpu.memory_space<any>>) dst(%105 : memref<1x8xf32, #tpu.memory_space<vmem>>)
      %c3_i32_72 = arith.constant 3 : i32
      %c0_i32_73 = arith.constant 0 : i32
      %108 = tpu.memref_slice %arg3[%59, %c0_i32_73] : memref<512x8xf32, #tpu.memory_space<any>> -> memref<1x8xf32, #tpu.memory_space<any>>
      %c3_i32_74 = arith.constant 3 : i32
      %c0_i32_75 = arith.constant 0 : i32
      %109 = tpu.memref_slice %arg7[%c3_i32_74, %c0_i32_75] : memref<8x8xf32, #tpu.memory_space<vmem>> -> memref<1x8xf32, #tpu.memory_space<vmem>>
      %110 = tpu.memref_slice %arg11[%c3_i32_72] : memref<8x!tpu.dma_semaphore, #tpu.memory_space<semaphore_mem>> -> memref<1x!tpu.dma_semaphore, #tpu.memory_space<semaphore_mem>>
      %111 = tpu.memref_squeeze %110 : memref<1x!tpu.dma_semaphore, #tpu.memory_space<semaphore_mem>> -> memref<!tpu.dma_semaphore, #tpu.memory_space<semaphore_mem>>
      tpu.wait_dma2 semaphore(%111 : memref<!tpu.dma_semaphore, #tpu.memory_space<semaphore_mem>>) src(%108 : memref<1x8xf32, #tpu.memory_space<any>>) dst(%109 : memref<1x8xf32, #tpu.memory_space<vmem>>)
      %c4_i32_76 = arith.constant 4 : i32
      %c0_i32_77 = arith.constant 0 : i32
      %112 = tpu.memref_slice %arg3[%67, %c0_i32_77] : memref<512x8xf32, #tpu.memory_space<any>> -> memref<1x8xf32, #tpu.memory_space<any>>
      %c4_i32_78 = arith.constant 4 : i32
      %c0_i32_79 = arith.constant 0 : i32
      %113 = tpu.memref_slice %arg7[%c4_i32_78, %c0_i32_79] : memref<8x8xf32, #tpu.memory_space<vmem>> -> memref<1x8xf32, #tpu.memory_space<vmem>>
      %114 = tpu.memref_slice %arg11[%c4_i32_76] : memref<8x!tpu.dma_semaphore, #tpu.memory_space<semaphore_mem>> -> memref<1x!tpu.dma_semaphore, #tpu.memory_space<semaphore_mem>>
      %115 = tpu.memref_squeeze %114 : memref<1x!tpu.dma_semaphore, #tpu.memory_space<semaphore_mem>> -> memref<!tpu.dma_semaphore, #tpu.memory_space<semaphore_mem>>
      tpu.wait_dma2 semaphore(%115 : memref<!tpu.dma_semaphore, #tpu.memory_space<semaphore_mem>>) src(%112 : memref<1x8xf32, #tpu.memory_space<any>>) dst(%113 : memref<1x8xf32, #tpu.memory_space<vmem>>)
      %c5_i32_80 = arith.constant 5 : i32
      %c0_i32_81 = arith.constant 0 : i32
      %116 = tpu.memref_slice %arg3[%75, %c0_i32_81] : memref<512x8xf32, #tpu.memory_space<any>> -> memref<1x8xf32, #tpu.memory_space<any>>
      %c5_i32_82 = arith.constant 5 : i32
      %c0_i32_83 = arith.constant 0 : i32
      %117 = tpu.memref_slice %arg7[%c5_i32_82, %c0_i32_83] : memref<8x8xf32, #tpu.memory_space<vmem>> -> memref<1x8xf32, #tpu.memory_space<vmem>>
      %118 = tpu.memref_slice %arg11[%c5_i32_80] : memref<8x!tpu.dma_semaphore, #tpu.memory_space<semaphore_mem>> -> memref<1x!tpu.dma_semaphore, #tpu.memory_space<semaphore_mem>>
      %119 = tpu.memref_squeeze %118 : memref<1x!tpu.dma_semaphore, #tpu.memory_space<semaphore_mem>> -> memref<!tpu.dma_semaphore, #tpu.memory_space<semaphore_mem>>
      tpu.wait_dma2 semaphore(%119 : memref<!tpu.dma_semaphore, #tpu.memory_space<semaphore_mem>>) src(%116 : memref<1x8xf32, #tpu.memory_space<any>>) dst(%117 : memref<1x8xf32, #tpu.memory_space<vmem>>)
      %c6_i32_84 = arith.constant 6 : i32
      %c0_i32_85 = arith.constant 0 : i32
      %120 = tpu.memref_slice %arg3[%83, %c0_i32_85] : memref<512x8xf32, #tpu.memory_space<any>> -> memref<1x8xf32, #tpu.memory_space<any>>
      %c6_i32_86 = arith.constant 6 : i32
      %c0_i32_87 = arith.constant 0 : i32
      %121 = tpu.memref_slice %arg7[%c6_i32_86, %c0_i32_87] : memref<8x8xf32, #tpu.memory_space<vmem>> -> memref<1x8xf32, #tpu.memory_space<vmem>>
      %122 = tpu.memref_slice %arg11[%c6_i32_84] : memref<8x!tpu.dma_semaphore, #tpu.memory_space<semaphore_mem>> -> memref<1x!tpu.dma_semaphore, #tpu.memory_space<semaphore_mem>>
      %123 = tpu.memref_squeeze %122 : memref<1x!tpu.dma_semaphore, #tpu.memory_space<semaphore_mem>> -> memref<!tpu.dma_semaphore, #tpu.memory_space<semaphore_mem>>
      tpu.wait_dma2 semaphore(%123 : memref<!tpu.dma_semaphore, #tpu.memory_space<semaphore_mem>>) src(%120 : memref<1x8xf32, #tpu.memory_space<any>>) dst(%121 : memref<1x8xf32, #tpu.memory_space<vmem>>)
      %c7_i32_88 = arith.constant 7 : i32
      %c0_i32_89 = arith.constant 0 : i32
      %124 = tpu.memref_slice %arg3[%91, %c0_i32_89] : memref<512x8xf32, #tpu.memory_space<any>> -> memref<1x8xf32, #tpu.memory_space<any>>
      %c7_i32_90 = arith.constant 7 : i32
      %c0_i32_91 = arith.constant 0 : i32
      %125 = tpu.memref_slice %arg7[%c7_i32_90, %c0_i32_91] : memref<8x8xf32, #tpu.memory_space<vmem>> -> memref<1x8xf32, #tpu.memory_space<vmem>>
      %126 = tpu.memref_slice %arg11[%c7_i32_88] : memref<8x!tpu.dma_semaphore, #tpu.memory_space<semaphore_mem>> -> memref<1x!tpu.dma_semaphore, #tpu.memory_space<semaphore_mem>>
      %127 = tpu.memref_squeeze %126 : memref<1x!tpu.dma_semaphore, #tpu.memory_space<semaphore_mem>> -> memref<!tpu.dma_semaphore, #tpu.memory_space<semaphore_mem>>
      tpu.wait_dma2 semaphore(%127 : memref<!tpu.dma_semaphore, #tpu.memory_space<semaphore_mem>>) src(%124 : memref<1x8xf32, #tpu.memory_space<any>>) dst(%125 : memref<1x8xf32, #tpu.memory_space<vmem>>)
      %cst_92 = arith.constant 0xFF800000 : f32
      %128 = vector.broadcast %cst_92 : f32 to vector<8x1xf32>
      %c0_93 = arith.constant 0 : index
      %c0_94 = arith.constant 0 : index
      %129 = vector.load %arg9[%c0_93, %c0_94] : memref<8x1xf32, #tpu.memory_space<vmem>>, vector<8x1xf32>
      tpu.vector_store %arg9[%c0_93, %c0_94], %128 {strides = array<i32>} : memref<8x1xf32, #tpu.memory_space<vmem>>, vector<8x1xf32>,
      %cst_95 = arith.constant 0.000000e+00 : f32
      %130 = vector.broadcast %cst_95 : f32 to vector<8x1xf32>
      %c0_96 = arith.constant 0 : index
      %c0_97 = arith.constant 0 : index
      %131 = vector.load %arg10[%c0_96, %c0_97] : memref<8x1xf32, #tpu.memory_space<vmem>>, vector<8x1xf32>
      tpu.vector_store %arg10[%c0_96, %c0_97], %130 {strides = array<i32>} : memref<8x1xf32, #tpu.memory_space<vmem>>, vector<8x1xf32>,
    } else {
    }
    %c0 = arith.constant 0 : index
    %c0_1 = arith.constant 0 : index
    %3 = vector.load %arg7[%c0, %c0_1] : memref<8x8xf32, #tpu.memory_space<vmem>>, vector<8x8xf32>
    %c0_2 = arith.constant 0 : index
    %c0_3 = arith.constant 0 : index
    %4 = vector.load %arg4[%c0_2, %c0_3] : memref<128x8xf32, #tpu.memory_space<vmem>>, vector<128x8xf32>
    %cst = arith.constant dense<0.000000e+00> : vector<8x128xf32>
    %5 = tpu.matmul %3, %4, %cst {dimension_numbers = #tpu.dot_dimension_numbers<[1], [1], [0], [0], [0, 0, 1, 0], [], []>} : vector<8x8xf32>, vector<128x8xf32>, vector<8x128xf32> -> vector<8x128xf32>
    %c0_4 = arith.constant 0 : index
    %c0_5 = arith.constant 0 : index
    %6 = vector.load %arg5[%c0_4, %c0_5] : memref<1x128xf32, #tpu.memory_space<vmem>>, vector<1x128xf32>
    %7 = vector.broadcast %6 : vector<1x128xf32> to vector<8x128xf32>
    %8 = arith.addf %5, %7 : vector<8x128xf32>
    %c0_6 = arith.constant 0 : index
    %c0_7 = arith.constant 0 : index
    %9 = vector.load %arg9[%c0_6, %c0_7] : memref<8x1xf32, #tpu.memory_space<vmem>>, vector<8x1xf32>
    %cst_8 = arith.constant dense<0xFF800000> : vector<8xf32>
    %10 = vector.multi_reduction <maximumf>, %8, %cst_8 [1] : vector<8x128xf32> to vector<8xf32>
    %11 = vector.shape_cast %10 : vector<8xf32> to vector<8x1xf32>
    %12 = arith.maximumf %9, %11 : vector<8x1xf32>
    %c0_9 = arith.constant 0 : index
    %c0_10 = arith.constant 0 : index
    %13 = vector.load %arg10[%c0_9, %c0_10] : memref<8x1xf32, #tpu.memory_space<vmem>>, vector<8x1xf32>
    %14 = arith.subf %9, %12 : vector<8x1xf32>
    %15 = math.exp %14 : vector<8x1xf32>
    %16 = arith.mulf %13, %15 : vector<8x1xf32>
    %17 = vector.broadcast %12 : vector<8x1xf32> to vector<8x128xf32>
    %18 = arith.subf %8, %17 : vector<8x128xf32>
    %19 = math.exp %18 : vector<8x128xf32>
    %cst_11 = arith.constant dense<0.000000e+00> : vector<8xf32>
    %20 = vector.multi_reduction <add>, %19, %cst_11 [1] : vector<8x128xf32> to vector<8xf32>
    %21 = vector.shape_cast %20 : vector<8xf32> to vector<8x1xf32>
    %22 = arith.addf %16, %21 : vector<8x1xf32>
    %c0_12 = arith.constant 0 : index
    %c0_13 = arith.constant 0 : index
    %23 = vector.load %arg10[%c0_12, %c0_13] : memref<8x1xf32, #tpu.memory_space<vmem>>, vector<8x1xf32>
    tpu.vector_store %arg10[%c0_12, %c0_13], %22 {strides = array<i32>} : memref<8x1xf32, #tpu.memory_space<vmem>>, vector<8x1xf32>,
    %c0_14 = arith.constant 0 : index
    %c0_15 = arith.constant 0 : index
    %24 = vector.load %arg9[%c0_14, %c0_15] : memref<8x1xf32, #tpu.memory_space<vmem>>, vector<8x1xf32>
    tpu.vector_store %arg9[%c0_14, %c0_15], %12 {strides = array<i32>} : memref<8x1xf32, #tpu.memory_space<vmem>>, vector<8x1xf32>,
    %25 = arith.index_cast %arg1 : i32 to index
    %c0_16 = arith.constant 0 : index
    %c0_17 = arith.constant 0 : index
    %26 = vector.load %arg8[%25, %c0_16, %c0_17] : memref<4x8x128xf32, #tpu.memory_space<vmem>>, vector<1x8x128xf32>
    %27 = vector.shape_cast %26 : vector<1x8x128xf32> to vector<8x128xf32>
    %28 = vector.shape_cast %8 : vector<8x128xf32> to vector<1x8x128xf32>
    tpu.vector_store %arg8[%25, %c0_16, %c0_17], %28 {strides = array<i32>} : memref<4x8x128xf32, #tpu.memory_space<vmem>>, vector<1x8x128xf32>,
    %c3_i32 = arith.constant 3 : i32
    %29 = arith.cmpi eq, %arg1, %c3_i32 : i32
    %30 = arith.extui %29 : i1 to i32
    %c0_i32_18 = arith.constant 0 : i32
    %31 = arith.cmpi ne, %30, %c0_i32_18 : i32
    scf.if %31 {
      %c0_19 = arith.constant 0 : index
      %c0_20 = arith.constant 0 : index
      %32 = vector.load %arg9[%c0_19, %c0_20] : memref<8x1xf32, #tpu.memory_space<vmem>>, vector<8x1xf32>
      %c0_21 = arith.constant 0 : index
      %c0_22 = arith.constant 0 : index
      %33 = vector.load %arg10[%c0_21, %c0_22] : memref<8x1xf32, #tpu.memory_space<vmem>>, vector<8x1xf32>
      %34 = math.log %33 : vector<8x1xf32>
      %35 = arith.addf %32, %34 : vector<8x1xf32>
      %c0_23 = arith.constant 0 : index
      %c0_24 = arith.constant 0 : index
      %c0_25 = arith.constant 0 : index
      %36 = vector.load %arg8[%c0_23, %c0_24, %c0_25] : memref<4x8x128xf32, #tpu.memory_space<vmem>>, vector<1x8x128xf32>
      %37 = vector.shape_cast %36 : vector<1x8x128xf32> to vector<8x128xf32>
      %38 = vector.broadcast %35 : vector<8x1xf32> to vector<8x128xf32>
      %39 = arith.subf %37, %38 : vector<8x128xf32>
      %c0_26 = arith.constant 0 : index
      %c0_27 = arith.constant 0 : index
      %40 = vector.load %arg6[%c0_26, %c0_27] : memref<8x512xf32, #tpu.memory_space<vmem>>, vector<8x128xf32>
      tpu.vector_store %arg6[%c0_26, %c0_27], %39 {strides = array<i32>} : memref<8x512xf32, #tpu.memory_space<vmem>>, vector<8x128xf32>,
      %c1 = arith.constant 1 : index
      %c0_28 = arith.constant 0 : index
      %c0_29 = arith.constant 0 : index
      %41 = vector.load %arg8[%c1, %c0_28, %c0_29] : memref<4x8x128xf32, #tpu.memory_space<vmem>>, vector<1x8x128xf32>
      %42 = vector.shape_cast %41 : vector<1x8x128xf32> to vector<8x128xf32>
      %43 = vector.broadcast %35 : vector<8x1xf32> to vector<8x128xf32>
      %44 = arith.subf %42, %43 : vector<8x128xf32>
      %c0_30 = arith.constant 0 : index
      %c128 = arith.constant 128 : index
      %45 = vector.load %arg6[%c0_30, %c128] : memref<8x512xf32, #tpu.memory_space<vmem>>, vector<8x128xf32>
      tpu.vector_store %arg6[%c0_30, %c128], %44 {strides = array<i32>} : memref<8x512xf32, #tpu.memory_space<vmem>>, vector<8x128xf32>,
      %c2 = arith.constant 2 : index
      %c0_31 = arith.constant 0 : index
      %c0_32 = arith.constant 0 : index
      %46 = vector.load %arg8[%c2, %c0_31, %c0_32] : memref<4x8x128xf32, #tpu.memory_space<vmem>>, vector<1x8x128xf32>
      %47 = vector.shape_cast %46 : vector<1x8x128xf32> to vector<8x128xf32>
      %48 = vector.broadcast %35 : vector<8x1xf32> to vector<8x128xf32>
      %49 = arith.subf %47, %48 : vector<8x128xf32>
      %c0_33 = arith.constant 0 : index
      %c256 = arith.constant 256 : index
      %50 = vector.load %arg6[%c0_33, %c256] : memref<8x512xf32, #tpu.memory_space<vmem>>, vector<8x128xf32>
      tpu.vector_store %arg6[%c0_33, %c256], %49 {strides = array<i32>} : memref<8x512xf32, #tpu.memory_space<vmem>>, vector<8x128xf32>,
      %c3 = arith.constant 3 : index
      %c0_34 = arith.constant 0 : index
      %c0_35 = arith.constant 0 : index
      %51 = vector.load %arg8[%c3, %c0_34, %c0_35] : memref<4x8x128xf32, #tpu.memory_space<vmem>>, vector<1x8x128xf32>
      %52 = vector.shape_cast %51 : vector<1x8x128xf32> to vector<8x128xf32>
      %53 = vector.broadcast %35 : vector<8x1xf32> to vector<8x128xf32>
      %54 = arith.subf %52, %53 : vector<8x128xf32>
      %c0_36 = arith.constant 0 : index
      %c384 = arith.constant 384 : index
      %55 = vector.load %arg6[%c0_36, %c384] : memref<8x512xf32, #tpu.memory_space<vmem>>, vector<8x128xf32>
      tpu.vector_store %arg6[%c0_36, %c384], %54 {strides = array<i32>} : memref<8x512xf32, #tpu.memory_space<vmem>>, vector<8x128xf32>,
    } else {
    }
    return
  }
  func.func @transform_1(%arg0: i32, %arg1: i32, %arg2: memref<16xi32, #tpu.memory_space<smem>>) -> (i32, i32) {
    %c0_i32 = arith.constant 0 : i32
    %c0_i32_0 = arith.constant 0 : i32
    return %arg1, %c0_i32 : i32, i32
  }
  func.func @transform_2(%arg0: i32, %arg1: i32, %arg2: memref<16xi32, #tpu.memory_space<smem>>) -> (i32, i32) {
    %c0_i32 = arith.constant 0 : i32
    %c0_i32_0 = arith.constant 0 : i32
    return %c0_i32, %arg1 : i32, i32
  }
  func.func @transform_3(%arg0: i32, %arg1: i32, %arg2: memref<16xi32, #tpu.memory_space<smem>>) -> (i32, i32) {
    %c0_i32 = arith.constant 0 : i32
    %c0_i32_0 = arith.constant 0 : i32
    return %arg0, %c0_i32 : i32, i32
  }
}

</mosaic_0001>

<bundles_post_ra>
// kernel: tpu_custom_call.1
= control target key start
LH: loop header
LB: loop body
LE: loop exit
PB: predicated region body
PF: predicated region fallthrough
CT: control target
= control target key end

     0   :  { %s1109_s18 = smov [#allocation8]   ;;  %s1357_s0 = inlined_call_operand.vmem [shape: s32[16], index: 0, kind: input, shape index: {}]   ;;  %s1358_s1 = inlined_call_operand.vmem [shape: f32[512,8], index: 1, kind: input, shape index: {}]   ;;  %s1359_s2 = inlined_call_operand.vmem [shape: f32[512,8], index: 2, kind: input, shape index: {}]   ;;  %s1360_s3 = inlined_call_operand.vmem [shape: f32[1,512], index: 3, kind: input, shape index: {}]   ;;  %s1361_s4 = inlined_call_operand.hbm [shape: f32[16,512], index: 4, kind: output, shape index: {}]  }
   0x1   :  { %1364 = sst [smem:[#allocation31_spill]] %s1359_s2  ;;  %s10_s17 = sshll.u32 %s1357_s0, 4  ;;  %s11_s17 = int_to_ptr.vmem [resolvable:$true] %s10_s17 }
   0x2   :  { %13 = dma.vmem_to_smem %s11_s17, 16, %s1109_s18, [#allocation7] }
   0x3   :  { %1055 = dma.done.wait [#allocation7], 16 }
   0x4   :  { %1056 = vsyncadd [#allocation7], 4294967280 }
   0x5   :  { %16 = sfence }
   0x6   :  { %17 = vsyncpa [#allocation10], 0 }
   0x7   :  { %19 = vsyncpa [#allocation10 + $0x1], 0  ;;  %s1142_s19 = smov 0   ;;  %s1144_s20 = smov 0  }
   0x8   :  { %s1146_s21 = smov 0   ;;  %s1148_s22 = smov 0  }
   0x9   :  { %s1150_s23 = smov 0   ;;  %s1152_s24 = smov 0  }
   0xa   :  { %s1154_s0 = smov 0   ;;  %s1156_s25 = smov 0  }
   0xb LB: > { %s855_s26 = sadd.s32 4294967295, %s1107_s25   ;;  %s856_s27 = sadd.s32 4294967294, %s1107_s25   ;;  %s1107_s25 = sphi %s1156_s25, %s25_s25   ;;  %s1103_s0 = sphi %s1154_s0, %s1380_s0   ;;  %s1099_s24 = sphi %s1152_s24, %s1379_s24   ;;  %s1095_s23 = sphi %s1150_s23, %s1378_s23   ;;  %s1091_s22 = sphi %s1148_s22, %s1377_s22   ;;  %s1087_s21 = sphi %s1146_s21, %s1376_s21   ;;  %s1083_s20 = sphi %s1144_s20, %s1375_s20   ;;  %s1079_s19 = sphi %s1142_s19, %s1374_s19  }
   0xc   : > { %s34_s28 = sadd.s32 1, %s1099_s24  ;;  %s37_s29 = sadd.s32 1, %s1103_s0 }
   0xd   : > { %p35_p0 = scmp.ge.s32.totalorder %s34_s28, 4  ;;  %p106_p1 = scmp.ne.s32.totalorder %s1087_s21, %s1083_s20 }
   0xe   : > { %p107_p2 = scmp.eq.s32.totalorder %s855_s26, 7  ;;  %p112_p4 = scmp.ne.s32.totalorder %s1083_s20, %s1079_s19 }
   0xf   : > { %s1382_s28 = smov (%p35_p0, %s34_s28), 0  ;;  %s1384_s29 = smov (!%p35_p0, %s37_s29), %s1103_s0 }
  0x10   : > { %1365 = sst [smem:[#allocation29_spill]] %s1382_s28  ;;  %p1191_p3 = por %p107_p2, %p106_p1 }
  0x11   : > { %p39_p5 = scmp.ge.s32.totalorder %s1384_s29, 2  ;;  %p113_p6 = scmp.eq.s32.totalorder %s856_s27, 7 }
  0x12   : > { %p859_p7 = scmp.ge.s32.totalorder %s1107_s25, 1  ;;  %p146_p8 = scmp.lt.s32.totalorder %s1107_s25, 9 }
  0x13   : > { %s1386_s29 = smov (%p39_p5, %s1384_s29), 0  ;;  %p1201_p9 = por %p113_p6, %p112_p4 }
  0x14   : > { %1367 = sst [smem:[#allocation30_spill]] %s1386_s29  ;;  %p147_p10 = pnand %p859_p7, %p146_p8 }
  0x15   : > { %s93_s6 = ssub.s32 %s1103_s0, %s1386_s29  ;;  %s96_s7 = sadd.s32 1, %s1087_s21 }
  0x16   : > { %p94_p11 = scmp.eq.s32.totalorder %s93_s6, 0  ;;  %150 = sbr.rel (%p147_p10) target bundleno = 838 (0x346), region = 28 }
  0x17   : > { %s1362_s9 = sand.u32 (!%p147_p10), 1, %s1083_s20   ;;  %s861_s10 = sshll.u32 (!%p147_p10), %s1091_s22, 4 }
  0x18   : > { %s1209_s8 = scalar_select %p94_p11, %s1087_s21, %s96_s7  }
  0x19   : > { %s860_s11 = sshll.u32 (!%p147_p10), %s1362_s9, 5  ;;  %p172_p12 = scmp.lt.s32.totalorder (!%p147_p10), %s861_s10, 63 }
  0x1a   : > { %p177_p13 = scmp.lt.s32.totalorder (!%p147_p10), %s1091_s22, 3  ;;  %s1369_s2 = sld [smem:[#allocation31_spill]] (!%p147_p10) }
  0x1b   : > { %s1388_s10 = smov (!%p172_p12, %s861_s10), 63  ;;  %s1228_s27 = scalar_lea.vmem [#allocation9], %s860_s11 }
  0x1c   : > { %s1217_s12 = scalar_select %p177_p13, %s1091_s22, 3 }
  0x1d   : > { %s862_s13 = sshll.u32 %s1388_s10, 3  ;;  %p863_p0 = scmp.ne.s32.totalorder %s1091_s22, 0 }
  0x1e   : > { %s1232_s6 = sshll.u32 (!%p863_p0), %s1095_s23, 3 }
  0x1f   : > { %183 = sbr.rel (%p863_p0) target bundleno = 129 (0x81), region = 32  ;;  %s185_s7 = sld [smem:[#allocation8 + %s1232_s6]] (!%p863_p0) }
  0x20   : > { %s1222_s16 = scalar_lea.vmem %s1369_s2, %s862_s13 }
  0x25   : > { %s186_s14 = scalar_lea.vmem %s1358_s1, %s185_s7 }
  0x26   : > { %v201_v0 = vld [vmem:[%s186_s14] sm:$0x1] }
  0x27   : > { %202 = vst [vmem:[#allocation2] sm:$0x1] %v201_v0 }
  0x28   : > { %220 = vsyncadd [#allocation6], 16  ;;  %s221_s13 = sadd.s32 1, %s1232_s6 }
  0x29   : > { %s222_s15 = sld [smem:[#allocation8 + %s221_s13]] }
  0x2f   : > { %s223_s18 = scalar_lea.vmem %s1358_s1, %s222_s15 }
  0x30   : > { %v240_v1 = vld [vmem:[%s223_s18] sm:$0x1] }
  0x31   : > { %241 = vst [vmem:[#allocation2 + $0x1] sm:$0x1] %v240_v1 }
  0x32   : > { %259 = vsyncadd [#allocation6 + $0x1], 16  ;;  %s260_s26 = sadd.s32 2, %s1232_s6 }
  0x33   : > { %s261_s2 = sld [smem:[#allocation8 + %s260_s26]] }
  0x39   : > { %s262_s9 = scalar_lea.vmem %s1358_s1, %s261_s2 }
  0x3a   : > { %v279_v2 = vld [vmem:[%s262_s9] sm:$0x1] }
  0x3b   : > { %280 = vst [vmem:[#allocation2 + $0x2] sm:$0x1] %v279_v2 }
  0x3c   : > { %298 = vsyncadd [#allocation6 + $0x2], 16  ;;  %s299_s7 = sadd.s32 3, %s1232_s6 }
  0x3d   : > { %s300_s10 = sld [smem:[#allocation8 + %s299_s7]] }
  0x43   : > { %s301_s15 = scalar_lea.vmem %s1358_s1, %s300_s10 }
  0x44   : > { %v318_v3 = vld [vmem:[%s301_s15] sm:$0x1] }
  0x45   : > { %319 = vst [vmem:[#allocation2 + $0x3] sm:$0x1] %v318_v3 }
  0x46   : > { %337 = vsyncadd [#allocation6 + $0x3], 16  ;;  %s338_s11 = sadd.s32 4, %s1232_s6 }
  0x47   : > { %s339_s26 = sld [smem:[#allocation8 + %s338_s11]] }
  0x4d   : > { %s340_s2 = scalar_lea.vmem %s1358_s1, %s339_s26 }
  0x4e   : > { %v357_v4 = vld [vmem:[%s340_s2] sm:$0x1] }
  0x4f   : > { %358 = vst [vmem:[#allocation2 + $0x4] sm:$0x1] %v357_v4 }
  0x50   : > { %376 = vsyncadd [#allocation6 + $0x4], 16  ;;  %s377_s28 = sadd.s32 5, %s1232_s6 }
  0x51   : > { %s378_s29 = sld [smem:[#allocation8 + %s377_s28]] }
  0x57   : > { %s379_s10 = scalar_lea.vmem %s1358_s1, %s378_s29 }
  0x58   : > { %v396_v5 = vld [vmem:[%s379_s10] sm:$0x1] }
  0x59   : > { %397 = vst [vmem:[#allocation2 + $0x5] sm:$0x1] %v396_v5 }
  0x5a   : > { %415 = vsyncadd [#allocation6 + $0x5], 16  ;;  %s416_s14 = sadd.s32 6, %s1232_s6 }
  0x5b   : > { %s417_s13 = sld [smem:[#allocation8 + %s416_s14]] }
  0x61   : > { %s418_s26 = scalar_lea.vmem %s1358_s1, %s417_s13 }
  0x62   : > { %v435_v6 = vld [vmem:[%s418_s26] sm:$0x1] }
  0x63   : > { %436 = vst [vmem:[#allocation2 + $0x6] sm:$0x1] %v435_v6 }
  0x64   : > { %454 = vsyncadd [#allocation6 + $0x6], 16  ;;  %s455_s17 = sadd.s32 7, %s1232_s6 }
  0x65   : > { %s456_s18 = sld [smem:[#allocation8 + %s455_s17]] }
  0x6b   : > { %s457_s29 = scalar_lea.vmem %s1358_s1, %s456_s18 }
  0x6c   : > { %v474_v7 = vld [vmem:[%s457_s29] sm:$0x1] }
  0x6d   : > { %475 = vst [vmem:[#allocation2 + $0x7] sm:$0x1] %v474_v7 }
  0x6e   : > { %493 = vsyncadd [#allocation6 + $0x7], 16 }
  0x6f   : > { %1057 = dma.done.wait [#allocation6], 16 }
  0x70   : > { %1058 = vsyncadd [#allocation6], 4294967280 }
  0x71   : > { %1059 = dma.done.wait [#allocation6 + $0x1], 16 }
  0x72   : > { %1060 = vsyncadd [#allocation6 + $0x1], 4294967280 }
  0x73   : > { %1061 = dma.done.wait [#allocation6 + $0x2], 16 }
  0x74   : > { %1062 = vsyncadd [#allocation6 + $0x2], 4294967280 }
  0x75   : > { %1063 = dma.done.wait [#allocation6 + $0x3], 16 }
  0x76   : > { %1064 = vsyncadd [#allocation6 + $0x3], 4294967280 }
  0x77   : > { %1065 = dma.done.wait [#allocation6 + $0x4], 16 }
  0x78   : > { %1066 = vsyncadd [#allocation6 + $0x4], 4294967280 }
  0x79   : > { %1067 = dma.done.wait [#allocation6 + $0x5], 16 }
  0x7a   : > { %1068 = vsyncadd [#allocation6 + $0x5], 4294967280 }
  0x7b   : > { %1069 = dma.done.wait [#allocation6 + $0x6], 16 }
  0x7c   : > { %1070 = vsyncadd [#allocation6 + $0x6], 4294967280 }
  0x7d   : > { %1071 = dma.done.wait [#allocation6 + $0x7], 16 }
  0x7e   : > { %1072 = vsyncadd [#allocation6 + $0x7], 4294967280  ;;  %vm511_vm0 = vcmask 7168   ;;  %v1110_v8 = vmov -inf   ;;  %v1111_v9 = vmov 0.0  }
  0x7f   : > { %512 = vst.msk [vmem:[#allocation4] sm:$0xff] %vm511_vm0, %v1110_v8 }
  0x80   : > { %513 = vst.msk [vmem:[#allocation5] sm:$0xff] %vm511_vm0, %v1111_v9 }
  0x81 PF: > { %v530_v10 = vld [vmem:[%s1222_s16 + $0x78] sm:$0xff]  ;;  %vm535_vm1 = vcmask 64512   ;;  %v529_v11 = vld [vmem:[%s1222_s16 + $0x70] sm:$0xff]  ;;  %v528_v12 = vld [vmem:[%s1222_s16 + $0x68] sm:$0xff]  ;;  %s1370_s7 = scalar_lea.vmem %s1360_s3, %s1217_s12  ;;  %s882_s10 = sshll.u32 %s1091_s22, 3  ;;  %v1112_v30 = vmov 0  }
  0x82   : > { %865 = vmatpush.xpose.msk.msra.mxu0 %vm535_vm1, %v530_v10  ;;  %v527_v13 = vld [vmem:[%s1222_s16 + $0x60] sm:$0xff]  ;;  %v526_v14 = vld [vmem:[%s1222_s16 + $0x58] sm:$0xff]  ;;  %v525_v15 = vld [vmem:[%s1222_s16 + $0x50] sm:$0xff]  ;;  %s631_s14 = scalar_lea.vmem [#allocation3], %s882_s10  ;;  %974 = vset.pattern.permute.xlu0 %v1112_v30  ;;  %vm627_vm2 = vcmask 7168   ;;  %p883_p1 = scmp.ne.s32.totalorder %s1091_s22, 3 }
  0x83   : > { %v524_v16 = vld [vmem:[%s1222_s16 + $0x48] sm:$0xff]  ;;  %v523_v17 = vld [vmem:[%s1222_s16 + $0x40] sm:$0xff]  ;;  %v522_v18 = vld [vmem:[%s1222_s16 + $0x38] sm:$0xff] }
  0x84   : > { %v521_v19 = vld [vmem:[%s1222_s16 + $0x30] sm:$0xff]  ;;  %v520_v20 = vld [vmem:[%s1222_s16 + $0x28] sm:$0xff]  ;;  %v519_v21 = vld [vmem:[%s1222_s16 + $0x20] sm:$0xff] }
  0x85   : > { %v518_v22 = vld [vmem:[%s1222_s16 + $0x18] sm:$0xff]  ;;  %v517_v23 = vld [vmem:[%s1222_s16 + $0x10] sm:$0xff]  ;;  %v516_v24 = vld [vmem:[%s1222_s16 + $0x8] sm:$0xff] }
  0x86   : > { %866 = vmatpush.xpose.msk.msra.mxu0 %vm535_vm1, %v529_v11  ;;  %v515_v25 = vld [vmem:[%s1222_s16] sm:$0xff]  ;;  %v607_v31 = vld [vmem:[#allocation4] sm:$0xff] }
  0x87   : > { %v514_v26 = vld [vmem:[#allocation2] sm:$0xff]  ;;  %v611_v41 = vld [vmem:[#allocation5] sm:$0xff] }
  0x88   : > { %v975_v27 = vld [vmem:[%s1370_s7] ss:$0 sm:$0xff] }
  0x8a   : > { %867 = vmatpush.xpose.msk.msra.mxu0 %vm535_vm1, %v528_v12 }
  0x8e   : > { %868 = vmatpush.xpose.msk.msra.mxu0 %vm535_vm1, %v527_v13 }
  0x92   : > { %869 = vmatpush.xpose.msk.msra.mxu0 %vm535_vm1, %v526_v14 }
  0x96   : > { %870 = vmatpush.xpose.msk.msra.mxu0 %vm535_vm1, %v525_v15 }
  0x9a   : > { %871 = vmatpush.xpose.msk.msra.mxu0 %vm535_vm1, %v524_v16 }
  0x9e   : > { %872 = vmatpush.xpose.msk.msra.mxu0 %vm535_vm1, %v523_v17 }
  0xa2   : > { %873 = vmatpush.xpose.msk.msra.mxu0 %vm535_vm1, %v522_v18 }
  0xa6   : > { %874 = vmatpush.xpose.msk.msra.mxu0 %vm535_vm1, %v521_v19 }
  0xaa   : > { %875 = vmatpush.xpose.msk.msra.mxu0 %vm535_vm1, %v520_v20 }
  0xae   : > { %876 = vmatpush.xpose.msk.msra.mxu0 %vm535_vm1, %v519_v21 }
  0xb2   : > { %877 = vmatpush.xpose.msk.msra.mxu0 %vm535_vm1, %v518_v22 }
  0xb6   : > { %878 = vmatpush.xpose.msk.msra.mxu0 %vm535_vm1, %v517_v23 }
  0xba   : > { %879 = vmatpush.xpose.msk.msra.mxu0 %vm535_vm1, %v516_v24 }
  0xbe   : > { %880 = vmatpush.xpose.msk.msra.mxu0 %vm535_vm1, %v515_v25 }
  0xc1   : > { %881 = vmatmul.msk.f32.vlgmr.msra.gmra.mxu0 %vm535_vm1, %v514_v26 }
 0x13e   : > { %v604_v28 = vpop.f32.mrf.mxu0 }
 0x13f   : > { %v605_v29 = vadd.f32 %v975_v27, %v604_v28 }
 0x141   : > { %632 = vst [vmem:[%s631_s14] sm:$0xff] %v605_v29  ;;  %608 = vmax.xlane.f32.xlu0 %v605_v29 }
 0x1b4   : > { %v609_v32 = vpop.xlane.xlu0 %608 }
 0x1b5   : > { %v610_v33 = vmax.f32 %v607_v31, %v609_v32 }
 0x1b7   : > { %v612_v34 = vsub.f32 %v607_v31, %v610_v33  ;;  %629 = vst.msk [vmem:[#allocation4] sm:$0xff] %vm627_vm2, %v610_v33  ;;  %618 = vperm.xlu0 %974, %v610_v33  }
 0x1b9   : > { %v613_v39 = vmul.f32 1.442695, %v612_v34 }
 0x229   : > { %v619_v35 = vpop.permute.xlu0 %618 }
 0x22a   : > { %v621_v36 = vsub.f32 %v605_v29, %v619_v35 }
 0x22c   : > { %v622_v37 = vmul.f32 1.442695, %v621_v36 }
 0x22e   : > { %976 = vpow2.f32 %v622_v37 }
 0x22f   : > { %978 = vpow2.f32 %v613_v39 }
 0x234   : > { %v977_v38 = vpop.eup %976 }
 0x235   : > { %624 = vadd.xlane.f32.xlu1 %v977_v38  ;;  %v979_v40 = vpop.eup %978 }
 0x236   : > { %v615_v42 = vmul.f32 %v979_v40, %v611_v41 }
 0x2a7   : > { %636 = sbr.rel (%p883_p1) target bundleno = 823 (0x337), region = 276 }
 0x2a8   : > { %v625_v43 = vpop.xlane.xlu1 %624 }
 0x2a9   : > { %v626_v44 = vadd.f32 %v625_v43, %v615_v42 }
 0x2ab   : > { %628 = vst.msk [vmem:[#allocation5] sm:$0xff] %vm627_vm2, %v626_v44 }
 0x2ac   : > { %v1113_v46 = vmov 0   ;;  %v637_v48 = vld [vmem:[#allocation4] sm:$0xff]  ;;  %v651_v52 = vld [vmem:[#allocation3 + $0x8] sm:$0xff]  ;;  %v655_v53 = vld [vmem:[#allocation3 + $0x10] sm:$0xff] }
 0x2ad   : > { %980 = vset.pattern.permute.xlu0 %v1113_v46  ;;  %v642_v51 = vld [vmem:[#allocation3] sm:$0xff]  ;;  %v659_v54 = vld [vmem:[#allocation3 + $0x18] sm:$0xff] }
 0x2b2   : > { %v638_v45 = vld [vmem:[#allocation5] sm:$0xff] }
 0x2b3   : > { %981 = vlog2.f32 %v638_v45 }
 0x2b9   : > { %v982_v47 = vpop.eup %981 }
 0x2ba   : > { %v640_v49 = vmul.f32 0.6931472, %v982_v47 }
 0x2bc   : > { %v641_v50 = vadd.f32 %v640_v49, %v637_v48 }
 0x2be   : > { %645 = vperm.xlu0 %980, %v641_v50  }
 0x330   : > { %v646_v55 = vpop.permute.xlu0 %645 }
 0x331   : > { %v648_v56 = vsub.f32 %v642_v51, %v646_v55  ;;  %v652_v57 = vsub.f32 %v651_v52, %v646_v55  ;;  %v656_v58 = vsub.f32 %v655_v53, %v646_v55  ;;  %v660_v59 = vsub.f32 %v659_v54, %v646_v55 }
 0x333   : > { %649 = vst [vmem:[%s1228_s27] sm:$0xff] %v648_v56 }
 0x334   : > { %653 = vst [vmem:[%s1228_s27 + $0x8] sm:$0xff] %v652_v57 }
 0x335   : > { %657 = vst [vmem:[%s1228_s27 + $0x10] sm:$0xff] %v656_v58 }
 0x336   : > { %661 = vst [vmem:[%s1228_s27 + $0x18] sm:$0xff] %v660_v59 }
 0x337 PF: > { %s897_s22 = sshll.u32 %s1095_s23, 5  ;;  %s676_s15 = sshll.u32 %s1228_s27, 4  ;;  %s677_s15 = int_to_ptr.vmem [resolvable:$true] %s676_s15 }
 0x338   : > { %s674_s13 = scalar_lea.hbm %s1361_s4, %s897_s22  ;;  %s1371_s26 = sand.u32 1, %s1083_s20  }
 0x339   : > { %s678_s11 = sshll.u32 %s674_s13, 4  ;;  %s663_s17 = scalar_lea.sflag [#allocation10], %s1371_s26  ;;  %s679_s11 = int_to_ptr.hbm [resolvable:$true] %s678_s11 }
 0x33a   : > { %s1009_s18 = sshra.s32 %s679_s11, 4  ;;  %s1015_s23 = scalar_lea.hbm %s1361_s4, 64  ;;  %s1010_s18 = int_to_ptr.hbm [resolvable:$true] %s1009_s18 }
 0x33b   : > { %s1011_s2 = scalar_lea.hbm %s1010_s18, 32  ;;  %p1016_p6 = scmp.lt.s32.totalorder %s1010_s18, %s1361_s4 }
 0x33c   : > { %p1012_p2 = scmp.ne.s32.totalorder %s1010_s18, %s1011_s2  ;;  %p1017_p7 = scmp.lt.s32.totalorder %s1015_s23, %s1011_s2 }
 0x33e   : > { %p1013_p4 = pnand %p1012_p2, %p1191_p3  ;;  %p1018_p8 = por %p1017_p7, %p1016_p6 }
 0x340   : > { %p1014_p5 = pneg %p1013_p4 }
 0x342   : > { %p1019_p10 = pnand %p1018_p8, %p1014_p5 }
 0x344   : > { %1022 = shalt.err (!%p1019_p10)
}
 0x345   : > { %898 = dma.vmem_to_hbm [thread:$0]  (%p1191_p3), %s677_s15, 512, %s679_s11, %s663_s17  }
 0x346 PF: > { %p904_p11 = scmp.ge.s32.totalorder %s1107_s25, 2  ;;  %s690_s27 = sand.u32 1, %s1079_s19  }
 0x347   : > { %s691_s7 = scalar_lea.sflag [#allocation10], %s690_s27 }
 0x348   : > { %p901_p12 = pnand %p904_p11, %p1201_p9 }
 0x34a   : > { %p902_p13 = pneg %p901_p12 }
 0x34c   : > { %1074 = dma.done.wait (%p902_p13), %s691_s7, 512  }
 0x34d   : > { %1076 = vsyncadd (%p902_p13), %s691_s7, 4294966784  ;;  %s25_s25 = sadd.s32 1, %s1107_s25   ;;  %s1372_s30 = sld [smem:[#allocation29_spill]] }
 0x34e   : > { %p22_p0 = scmp.ge.s32.totalorder %s25_s25, 10   ;;  %s1373_s10 = sld [smem:[#allocation30_spill]] }
 0x34f   : > { %s1374_s19 = smov %s1083_s20  ;;  %s1375_s20 = smov %s1087_s21 }
 0x350   : > { %s1376_s21 = smov %s1209_s8  ;;  %s1377_s22 = smov %s1099_s24 }
 0x351   : > { %s1378_s23 = smov %s1103_s0  ;;  %24 = sbr.rel (!%p22_p0) target bundleno = 11 (0xb), region = 379 }
 0x353   : > { %s1379_s24 = smov %s1372_s30 }
 0x354   : > { %s1380_s0 = smov %s1373_s10 }
 0x356   :  { %697 = vsyncpa [#allocation10], 1 }
 0x357   :  { %699 = vsyncpa [#allocation10 + $0x1], 1 }
 0x358   :  { %700 = vsyncmov [#allocation6] }
 0x35b   :  { %s701_s5 = vpop.sfrf %700 }
 0x35c   :  { %p889_p3 = scmp.ne.s32.totalorder %s701_s5, 0 }
 0x35e   :  { %705 = shalt.err (%p889_p3)  }
 0x35f   :  { %707 = vsyncmov [#allocation6 + $0x1] }
 0x362   :  { %s708_s14 = vpop.sfrf %707 }
 0x363   :  { %p890_p9 = scmp.ne.s32.totalorder %s708_s14, 0 }
 0x365   :  { %712 = shalt.err (%p890_p9)  }
 0x366   :  { %714 = vsyncmov [#allocation6 + $0x2] }
 0x369   :  { %s715_s8 = vpop.sfrf %714 }
 0x36a   :  { %p891_p1 = scmp.ne.s32.totalorder %s715_s8, 0 }
 0x36c   :  { %719 = shalt.err (%p891_p1)  }
 0x36d   :  { %721 = vsyncmov [#allocation6 + $0x3] }
 0x370   :  { %s722_s12 = vpop.sfrf %721 }
 0x371   :  { %p892_p2 = scmp.ne.s32.totalorder %s722_s12, 0 }
 0x373   :  { %726 = shalt.err (%p892_p2)  }
 0x374   :  { %728 = vsyncmov [#allocation6 + $0x4] }
 0x377   :  { %s729_s25 = vpop.sfrf %728 }
 0x378   :  { %p893_p4 = scmp.ne.s32.totalorder %s729_s25, 0 }
 0x37a   :  { %733 = shalt.err (%p893_p4)  }
 0x37b   :  { %735 = vsyncmov [#allocation6 + $0x5] }
 0x37e   :  { %s736_s1 = vpop.sfrf %735 }
 0x37f   :  { %p894_p5 = scmp.ne.s32.totalorder %s736_s1, 0 }
 0x381   :  { %740 = shalt.err (%p894_p5)  }
 0x382   :  { %742 = vsyncmov [#allocation6 + $0x6] }
 0x385   :  { %s743_s3 = vpop.sfrf %742 }
 0x386   :  { %p895_p6 = scmp.ne.s32.totalorder %s743_s3, 0 }
 0x388   :  { %747 = shalt.err (%p895_p6)  }
 0x389   :  { %749 = vsyncmov [#allocation6 + $0x7] }
 0x38c   :  { %s750_s4 = vpop.sfrf %749 }
 0x38d   :  { %p896_p7 = scmp.ne.s32.totalorder %s750_s4, 0 }
 0x38f   :  { %754 = shalt.err (%p896_p7)  }

</bundles_post_ra>
